<compile_context>
chip_gen: v5e
topology: v5e:2x2
jax: 0.10.0
libtpu: 0.0.40
codegen_flags: <defaults>
</compile_context>

<pallas_src>
import functools

import jax
import jax.numpy as jnp
from jax import lax
from jax.experimental import pallas as pl
from jax.experimental.pallas import tpu as pltpu

_EPS = 1e-8
_HALF_LOG_2PI = 0.9189385332046727  # 0.5 * log(2*pi)

# Tiling knobs (f32-equivalent bytes; bf16 inputs simply use less VMEM).
_MAX_COL_TILE = 512               # lane-dense, keeps vreg pressure modest
_MAX_ROW_TILE = 4096
_TARGET_STREAM_BYTES = 16 << 20   # total double-buffered input-block VMEM target
_VMEM_LIMIT_BYTES = 32 << 20      # explicit (v5e scoped default is only 16 MiB)


def _lgamma_pos(x):
    """log-Gamma for strictly positive x (shift-by-6 + Stirling series).

    ~1e-6 relative accuracy in f32 for x > 0.  The 6-term shift product is
    factored (t = x(x+5); (x+1)(x+4) = t+4; (x+2)(x+3) = t+6), saving ~8 VALU
    ops per call, and split over two logs so the largest intermediate grows
    like x^4 (f32-safe to x ~ 4e9); the extra log goes to the EUP slot, which
    has plenty of slack in this VALU-bound kernel.  The series reciprocal uses
    the approximate EUP vrcp (series term <= ~0.013, error negligible).
    """
    z = x + 6.0
    zinv = pl.reciprocal(z, approx=True)
    zinv2 = zinv * zinv
    series = zinv * (
        (1.0 / 12.0)
        + zinv2 * (
            (-1.0 / 360.0)
            + zinv2 * ((1.0 / 1260.0) + zinv2 * (-1.0 / 1680.0))
        )
    )
    lg_shifted = (z - 0.5) * jnp.log(z) - z + _HALF_LOG_2PI + series
    t = x * (x + 5.0)
    return lg_shifted - jnp.log(t * (t + 4.0)) - jnp.log(t + 6.0)


def _nb_res(mu, y, theta, log_theta_eps, lgamma_theta):
    """Per-element NB log-likelihood term (negated later in the wrapper)."""
    log_theta_mu_eps = jnp.log(theta + mu + _EPS)
    res = (
        theta * (log_theta_eps - log_theta_mu_eps)
        + y * (jnp.log(mu + _EPS) - log_theta_mu_eps)
        + _lgamma_pos(y + theta)
        - lgamma_theta
        - _lgamma_pos(y + 1.0)
    )
    # _nan2inf: NaN -> +inf so the final mean becomes inf (torch semantics).
    return jnp.where(jnp.isnan(res), jnp.float32(jnp.inf), res)


def _fold8(res, slab_rows):
    """(slab_rows, ct) -> (8, ct) partial sum via aligned static sublane slices."""
    part = res[0:8, :]
    for k in range(1, slab_rows // 8):
        part = part + res[8 * k:8 * (k + 1), :]
    return part


def _nb_kernel_shared(mu_ref, y_ref, theta_ref, logt_ref, lgt_ref, out_ref, *,
                      num_slabs, slab_rows):
    """theta is a (1, ct) block; its log/lgamma are precomputed in the wrapper."""
    theta = theta_ref[...].astype(jnp.float32)   # (1, ct) — broadcasts over slab
    logt = logt_ref[...]                         # (1, ct) f32
    lgt = lgt_ref[...]                           # (1, ct) f32

    def slab(row0):
        mu = mu_ref[pl.ds(row0, slab_rows), :].astype(jnp.float32)
        y = y_ref[pl.ds(row0, slab_rows), :].astype(jnp.float32)
        return _fold8(_nb_res(mu, y, theta, logt, lgt), slab_rows)

    if num_slabs == 1:
        out_ref[...] = slab(0)
    else:
        def body(r, acc):
            return acc + slab(pl.multiple_of(r * slab_rows, slab_rows))
        out_ref[...] = lax.fori_loop(
            0, num_slabs, body, jnp.zeros(out_ref.shape, jnp.float32))


def _nb_kernel_row_theta(mu_ref, y_ref, theta_ref, out_ref, *,
                         num_slabs, slab_rows):
    """Per-row (n, d) theta: theta-only terms are computed per slab in-kernel."""
    def slab(row0):
        mu = mu_ref[pl.ds(row0, slab_rows), :].astype(jnp.float32)
        y = y_ref[pl.ds(row0, slab_rows), :].astype(jnp.float32)
        th = theta_ref[pl.ds(row0, slab_rows), :].astype(jnp.float32)
        return _fold8(
            _nb_res(mu, y, th, jnp.log(th + _EPS), _lgamma_pos(th)), slab_rows)

    if num_slabs == 1:
        out_ref[...] = slab(0)
    else:
        def body(r, acc):
            return acc + slab(pl.multiple_of(r * slab_rows, slab_rows))
        out_ref[...] = lax.fori_loop(
            0, num_slabs, body, jnp.zeros(out_ref.shape, jnp.float32))


def _ceil_to(x, m):
    return ((x + m - 1) // m) * m


def nb_loss(mu, y, theta):
    """Pallas implementation of NBLoss.forward(mu, y, theta). Returns a scalar."""
    mu = jnp.asarray(mu)
    y = jnp.asarray(y)
    theta = jnp.asarray(theta)

    def _stream(x):
        # Stream bf16/f32 directly (kernel upcasts per slab); others -> f32.
        return x if x.dtype in (jnp.float32, jnp.bfloat16) else x.astype(jnp.float32)

    mu, y, theta = _stream(mu), _stream(y), _stream(theta)

    n, d = mu.shape
    if theta.ndim == 1:
        theta = theta.reshape(1, -1)
    theta_per_row = theta.shape[0] != 1

    # --- column tiling: lane-dense (multiple of 128), balanced across tiles ---
    d128 = _ceil_to(d, 128)
    col_tile = min(d128, _MAX_COL_TILE)
    num_col_tiles = pl.cdiv(d128, col_tile)
    col_tile = _ceil_to(pl.cdiv(d128, num_col_tiles), 128)   # balance tiles
    d_pad = num_col_tiles * col_tile

    # Rows processed per inner-loop iteration: ~4K f32 elements so the loop
    # body has enough work to hide per-iteration overhead even at d=128.
    slab_rows = max(8, ((4096 // col_tile) // 8) * 8)

    # --- row tiling from the double-buffered VMEM budget ---
    n_streams = 3 if theta_per_row else 2
    block_budget = _TARGET_STREAM_BYTES // (2 * n_streams)   # bytes per input block
    row_tile = block_budget // (col_tile * 4)
    row_tile = max(slab_rows,
                   min(_MAX_ROW_TILE, (row_tile // slab_rows) * slab_rows))
    n_ceil = _ceil_to(n, slab_rows)
    row_tile = min(row_tile, n_ceil)
    num_row_tiles = pl.cdiv(n_ceil, row_tile)
    row_tile = _ceil_to(pl.cdiv(n_ceil, num_row_tiles), slab_rows)  # balance
    n_pad = num_row_tiles * row_tile
    num_slabs = row_tile // slab_rows

    # --- padding: mu=0, y=0 (and theta=1 where theta is padded) makes every
    # padded element contribute (numerically) zero, so no in-kernel mask. ---
    pad_r, pad_c = n_pad - n, d_pad - d
    if pad_r or pad_c:
        mu = jnp.pad(mu, ((0, pad_r), (0, pad_c)))
        y = jnp.pad(y, ((0, pad_r), (0, pad_c)))
    if theta_per_row:
        if pad_r or pad_c:
            theta = jnp.pad(theta, ((0, pad_r), (0, pad_c)), constant_values=1.0)
    elif pad_c:
        theta = jnp.pad(theta, ((0, 0), (0, pad_c)), constant_values=1.0)

    grid = (num_row_tiles, num_col_tiles)
    io_spec = pl.BlockSpec((row_tile, col_tile), lambda i, j: (i, j))
    out_spec = pl.BlockSpec((8, col_tile), lambda i, j: (i, j))

    if theta_per_row:
        kernel = functools.partial(_nb_kernel_row_theta,
                                   num_slabs=num_slabs, slab_rows=slab_rows)
        in_specs = [io_spec, io_spec,
                    pl.BlockSpec((row_tile, col_tile), lambda i, j: (i, j))]
        operands = (mu, y, theta)
    else:
        theta_f32 = theta.astype(jnp.float32)
        logt = jnp.log(theta_f32 + _EPS)
        lgt = jax.scipy.special.gammaln(theta_f32)
        kernel = functools.partial(_nb_kernel_shared,
                                   num_slabs=num_slabs, slab_rows=slab_rows)
        theta_spec = pl.BlockSpec((1, col_tile), lambda i, j: (0, j))
        in_specs = [io_spec, io_spec, theta_spec, theta_spec, theta_spec]
        operands = (mu, y, theta, logt, lgt)

    # TODO(synk): confirm on v7x that the "parallel" axes actually shard the
    # row/col tiles across both TensorCores; if not, switch to CORE_PARALLEL.
    partials = pl.pallas_call(
        kernel,
        out_shape=jax.ShapeDtypeStruct((num_row_tiles * 8, d_pad), jnp.float32),
        grid=grid,
        in_specs=in_specs,
        out_specs=out_spec,
        compiler_params=pltpu.CompilerParams(
            dimension_semantics=("parallel", "parallel"),
            vmem_limit_bytes=_VMEM_LIMIT_BYTES,
        ),
    )(*operands)

    # Tiny final reduction + (-1/(n*d)) scale on the partial-sum slabs.
    return -jnp.sum(partials) * jnp.float32(1.0 / (n * d))


def nb_loss_reference(mu, y, theta, eps=1e-8):
    """Pure-JAX reference matching the torch module semantics."""
    if theta.ndim == 1:
        theta = theta.reshape(1, -1)
    log_theta_mu_eps = jnp.log(theta + mu + eps)
    res = (
        theta * (jnp.log(theta + eps) - log_theta_mu_eps)
        + y * (jnp.log(mu + eps) - log_theta_mu_eps)
        + jax.scipy.special.gammaln(y + theta)
        - jax.scipy.special.gammaln(theta)
        - jax.scipy.special.gammaln(y + 1.0)
    )
    res = jnp.where(jnp.isnan(res), jnp.inf, res)
    return -jnp.mean(res)


if __name__ == "__main__":
    key = jax.random.PRNGKey(0)
    k1, k2, k3, k4 = jax.random.split(key, 4)

    # Case 1: shared (d,) theta, tile-divisible shapes.
    n, d = 32, 128
    mu = jax.random.uniform(k1, (n, d), minval=0.5, maxval=5.0, dtype=jnp.float32)
    theta = jax.random.uniform(k2, (d,), minval=0.5, maxval=2.0, dtype=jnp.float32)
    y = jnp.floor(
        jax.random.uniform(k3, (n, d), minval=0.0, maxval=10.0, dtype=jnp.float32))
    out = jax.block_until_ready(nb_loss(mu, y, theta))
    ref = nb_loss_reference(mu, y, theta)
    assert jnp.allclose(out, ref, rtol=1e-3, atol=1e-3), (out, ref)

    # Case 2: n not slab-divisible and d not a multiple of 128 (padding paths).
    n2, d2 = 30, 100
    out2 = jax.block_until_ready(nb_loss(mu[:n2, :d2], y[:n2, :d2], theta[:d2]))
    ref2 = nb_loss_reference(mu[:n2, :d2], y[:n2, :d2], theta[:d2])
    assert jnp.allclose(out2, ref2, rtol=1e-3, atol=1e-3), (out2, ref2)

    # Case 3: per-row (n, d) theta (exercises the second kernel variant).
    theta_nd = jax.random.uniform(k4, (n, d), minval=0.5, maxval=2.0,
                                  dtype=jnp.float32)
    out3 = jax.block_until_ready(nb_loss(mu, y, theta_nd))
    ref3 = nb_loss_reference(mu, y, theta_nd)
    assert jnp.allclose(out3, ref3, rtol=1e-3, atol=1e-3), (out3, ref3)

    print("KERNEL_OK")
</pallas_src>

<mosaic_0001>
module attributes {stable_mosaic.version = 11 : i64} {
  func.func @_nb_kernel_shared(%arg0: i32, %arg1: i32, %arg2: memref<32x128xf32, #tpu.memory_space<vmem>>, %arg3: memref<32x128xf32, #tpu.memory_space<vmem>>, %arg4: memref<1x128xf32, #tpu.memory_space<vmem>>, %arg5: memref<1x128xf32, #tpu.memory_space<vmem>>, %arg6: memref<1x128xf32, #tpu.memory_space<vmem>>, %arg7: memref<8x128xf32, #tpu.memory_space<vmem>>) attributes {dimension_semantics = [#tpu.dimension_semantics<parallel>, #tpu.dimension_semantics<parallel>], iteration_bounds = array<i64: 1, 1>, scalar_prefetch = 0 : i64, scratch_operands = 0 : i64, tpu.core_type = #tpu.core_type<tc>, window_params = [{transform_indices = @transform_0, window_bounds = array<i64: 32, 128>}, {transform_indices = @transform_1, window_bounds = array<i64: 32, 128>}, {transform_indices = @transform_2, window_bounds = array<i64: 1, 128>}, {transform_indices = @transform_3, window_bounds = array<i64: 1, 128>}, {transform_indices = @transform_4, window_bounds = array<i64: 1, 128>}, {transform_indices = @transform_5, window_bounds = array<i64: 8, 128>}]} {
    %c0 = arith.constant 0 : index
    %c0_0 = arith.constant 0 : index
    %0 = vector.load %arg4[%c0, %c0_0] : memref<1x128xf32, #tpu.memory_space<vmem>>, vector<1x128xf32>
    %c0_1 = arith.constant 0 : index
    %c0_2 = arith.constant 0 : index
    %1 = vector.load %arg5[%c0_1, %c0_2] : memref<1x128xf32, #tpu.memory_space<vmem>>, vector<1x128xf32>
    %c0_3 = arith.constant 0 : index
    %c0_4 = arith.constant 0 : index
    %2 = vector.load %arg6[%c0_3, %c0_4] : memref<1x128xf32, #tpu.memory_space<vmem>>, vector<1x128xf32>
    %c0_5 = arith.constant 0 : index
    %c0_6 = arith.constant 0 : index
    %3 = vector.load %arg2[%c0_5, %c0_6] : memref<32x128xf32, #tpu.memory_space<vmem>>, vector<32x128xf32>
    %c0_7 = arith.constant 0 : index
    %c0_8 = arith.constant 0 : index
    %4 = vector.load %arg3[%c0_7, %c0_8] : memref<32x128xf32, #tpu.memory_space<vmem>>, vector<32x128xf32>
    %5 = vector.broadcast %0 : vector<1x128xf32> to vector<32x128xf32>
    %6 = arith.addf %5, %3 : vector<32x128xf32>
    %cst = arith.constant 9.99999993E-9 : f32
    %7 = vector.broadcast %cst : f32 to vector<32x128xf32>
    %8 = arith.addf %6, %7 : vector<32x128xf32>
    %9 = math.log %8 : vector<32x128xf32>
    %10 = vector.broadcast %1 : vector<1x128xf32> to vector<32x128xf32>
    %11 = arith.subf %10, %9 : vector<32x128xf32>
    %12 = vector.broadcast %0 : vector<1x128xf32> to vector<32x128xf32>
    %13 = arith.mulf %12, %11 : vector<32x128xf32>
    %cst_9 = arith.constant 9.99999993E-9 : f32
    %14 = vector.broadcast %cst_9 : f32 to vector<32x128xf32>
    %15 = arith.addf %3, %14 : vector<32x128xf32>
    %16 = math.log %15 : vector<32x128xf32>
    %17 = arith.subf %16, %9 : vector<32x128xf32>
    %18 = arith.mulf %4, %17 : vector<32x128xf32>
    %19 = arith.addf %13, %18 : vector<32x128xf32>
    %20 = vector.broadcast %0 : vector<1x128xf32> to vector<32x128xf32>
    %21 = arith.addf %4, %20 : vector<32x128xf32>
    %cst_10 = arith.constant 6.000000e+00 : f32
    %22 = vector.broadcast %cst_10 : f32 to vector<32x128xf32>
    %23 = arith.addf %21, %22 : vector<32x128xf32>
    %24 = tpu.reciprocal %23 {approx = true} : vector<32x128xf32> -> vector<32x128xf32>
    %25 = arith.mulf %24, %24 : vector<32x128xf32>
    %cst_11 = arith.constant -5.95238118E-4 : f32
    %26 = vector.broadcast %cst_11 : f32 to vector<32x128xf32>
    %27 = arith.mulf %25, %26 : vector<32x128xf32>
    %cst_12 = arith.constant 7.93650805E-4 : f32
    %28 = vector.broadcast %cst_12 : f32 to vector<32x128xf32>
    %29 = arith.addf %28, %27 : vector<32x128xf32>
    %30 = arith.mulf %25, %29 : vector<32x128xf32>
    %cst_13 = arith.constant -0.00277777785 : f32
    %31 = vector.broadcast %cst_13 : f32 to vector<32x128xf32>
    %32 = arith.addf %31, %30 : vector<32x128xf32>
    %33 = arith.mulf %25, %32 : vector<32x128xf32>
    %cst_14 = arith.constant 0.0833333358 : f32
    %34 = vector.broadcast %cst_14 : f32 to vector<32x128xf32>
    %35 = arith.addf %34, %33 : vector<32x128xf32>
    %36 = arith.mulf %24, %35 : vector<32x128xf32>
    %cst_15 = arith.constant 5.000000e-01 : f32
    %37 = vector.broadcast %cst_15 : f32 to vector<32x128xf32>
    %38 = arith.subf %23, %37 : vector<32x128xf32>
    %39 = math.log %23 : vector<32x128xf32>
    %40 = arith.mulf %38, %39 : vector<32x128xf32>
    %41 = arith.subf %40, %23 : vector<32x128xf32>
    %cst_16 = arith.constant 0.918938517 : f32
    %42 = vector.broadcast %cst_16 : f32 to vector<32x128xf32>
    %43 = arith.addf %41, %42 : vector<32x128xf32>
    %44 = arith.addf %43, %36 : vector<32x128xf32>
    %cst_17 = arith.constant 5.000000e+00 : f32
    %45 = vector.broadcast %cst_17 : f32 to vector<32x128xf32>
    %46 = arith.addf %21, %45 : vector<32x128xf32>
    %47 = arith.mulf %21, %46 : vector<32x128xf32>
    %cst_18 = arith.constant 4.000000e+00 : f32
    %48 = vector.broadcast %cst_18 : f32 to vector<32x128xf32>
    %49 = arith.addf %47, %48 : vector<32x128xf32>
    %50 = arith.mulf %47, %49 : vector<32x128xf32>
    %51 = math.log %50 : vector<32x128xf32>
    %52 = arith.subf %44, %51 : vector<32x128xf32>
    %cst_19 = arith.constant 6.000000e+00 : f32
    %53 = vector.broadcast %cst_19 : f32 to vector<32x128xf32>
    %54 = arith.addf %47, %53 : vector<32x128xf32>
    %55 = math.log %54 : vector<32x128xf32>
    %56 = arith.subf %52, %55 : vector<32x128xf32>
    %57 = arith.addf %19, %56 : vector<32x128xf32>
    %58 = vector.broadcast %2 : vector<1x128xf32> to vector<32x128xf32>
    %59 = arith.subf %57, %58 : vector<32x128xf32>
    %cst_20 = arith.constant 1.000000e+00 : f32
    %60 = vector.broadcast %cst_20 : f32 to vector<32x128xf32>
    %61 = arith.addf %4, %60 : vector<32x128xf32>
    %cst_21 = arith.constant 6.000000e+00 : f32
    %62 = vector.broadcast %cst_21 : f32 to vector<32x128xf32>
    %63 = arith.addf %61, %62 : vector<32x128xf32>
    %64 = tpu.reciprocal %63 {approx = true} : vector<32x128xf32> -> vector<32x128xf32>
    %65 = arith.mulf %64, %64 : vector<32x128xf32>
    %cst_22 = arith.constant -5.95238118E-4 : f32
    %66 = vector.broadcast %cst_22 : f32 to vector<32x128xf32>
    %67 = arith.mulf %65, %66 : vector<32x128xf32>
    %cst_23 = arith.constant 7.93650805E-4 : f32
    %68 = vector.broadcast %cst_23 : f32 to vector<32x128xf32>
    %69 = arith.addf %68, %67 : vector<32x128xf32>
    %70 = arith.mulf %65, %69 : vector<32x128xf32>
    %cst_24 = arith.constant -0.00277777785 : f32
    %71 = vector.broadcast %cst_24 : f32 to vector<32x128xf32>
    %72 = arith.addf %71, %70 : vector<32x128xf32>
    %73 = arith.mulf %65, %72 : vector<32x128xf32>
    %cst_25 = arith.constant 0.0833333358 : f32
    %74 = vector.broadcast %cst_25 : f32 to vector<32x128xf32>
    %75 = arith.addf %74, %73 : vector<32x128xf32>
    %76 = arith.mulf %64, %75 : vector<32x128xf32>
    %cst_26 = arith.constant 5.000000e-01 : f32
    %77 = vector.broadcast %cst_26 : f32 to vector<32x128xf32>
    %78 = arith.subf %63, %77 : vector<32x128xf32>
    %79 = math.log %63 : vector<32x128xf32>
    %80 = arith.mulf %78, %79 : vector<32x128xf32>
    %81 = arith.subf %80, %63 : vector<32x128xf32>
    %cst_27 = arith.constant 0.918938517 : f32
    %82 = vector.broadcast %cst_27 : f32 to vector<32x128xf32>
    %83 = arith.addf %81, %82 : vector<32x128xf32>
    %84 = arith.addf %83, %76 : vector<32x128xf32>
    %cst_28 = arith.constant 5.000000e+00 : f32
    %85 = vector.broadcast %cst_28 : f32 to vector<32x128xf32>
    %86 = arith.addf %61, %85 : vector<32x128xf32>
    %87 = arith.mulf %61, %86 : vector<32x128xf32>
    %cst_29 = arith.constant 4.000000e+00 : f32
    %88 = vector.broadcast %cst_29 : f32 to vector<32x128xf32>
    %89 = arith.addf %87, %88 : vector<32x128xf32>
    %90 = arith.mulf %87, %89 : vector<32x128xf32>
    %91 = math.log %90 : vector<32x128xf32>
    %92 = arith.subf %84, %91 : vector<32x128xf32>
    %cst_30 = arith.constant 6.000000e+00 : f32
    %93 = vector.broadcast %cst_30 : f32 to vector<32x128xf32>
    %94 = arith.addf %87, %93 : vector<32x128xf32>
    %95 = math.log %94 : vector<32x128xf32>
    %96 = arith.subf %92, %95 : vector<32x128xf32>
    %97 = arith.subf %59, %96 : vector<32x128xf32>
    %98 = arith.cmpf one, %97, %97 : vector<32x128xf32>
    %cst_31 = arith.constant 0x7F800000 : f32
    %99 = vector.broadcast %cst_31 : f32 to vector<32x128xf32>
    %100 = arith.select %98, %99, %97 : vector<32x128xi1>, vector<32x128xf32>
    %101 = vector.extract_strided_slice %100 {offsets = [0, 0], sizes = [8, 128], strides = [1, 1]} : vector<32x128xf32> to vector<8x128xf32>
    %102 = vector.extract_strided_slice %100 {offsets = [8, 0], sizes = [8, 128], strides = [1, 1]} : vector<32x128xf32> to vector<8x128xf32>
    %103 = arith.addf %101, %102 : vector<8x128xf32>
    %104 = vector.extract_strided_slice %100 {offsets = [16, 0], sizes = [8, 128], strides = [1, 1]} : vector<32x128xf32> to vector<8x128xf32>
    %105 = arith.addf %103, %104 : vector<8x128xf32>
    %106 = vector.extract_strided_slice %100 {offsets = [24, 0], sizes = [8, 128], strides = [1, 1]} : vector<32x128xf32> to vector<8x128xf32>
    %107 = arith.addf %105, %106 : vector<8x128xf32>
    %c0_32 = arith.constant 0 : index
    %c0_33 = arith.constant 0 : index
    %108 = vector.load %arg7[%c0_32, %c0_33] : memref<8x128xf32, #tpu.memory_space<vmem>>, vector<8x128xf32>
    tpu.vector_store %arg7[%c0_32, %c0_33], %107 {strides = array<i32>} : memref<8x128xf32, #tpu.memory_space<vmem>>, vector<8x128xf32>,
    return
  }
  func.func @transform_0(%arg0: i32, %arg1: i32) -> (i32, i32) {
    %c0_i32 = arith.constant 0 : i32
    return %arg0, %arg1 : i32, i32
  }
  func.func @transform_1(%arg0: i32, %arg1: i32) -> (i32, i32) {
    %c0_i32 = arith.constant 0 : i32
    return %arg0, %arg1 : i32, i32
  }
  func.func @transform_2(%arg0: i32, %arg1: i32) -> (i32, i32) {
    %c0_i32 = arith.constant 0 : i32
    %c0_i32_0 = arith.constant 0 : i32
    return %c0_i32, %arg1 : i32, i32
  }
  func.func @transform_3(%arg0: i32, %arg1: i32) -> (i32, i32) {
    %c0_i32 = arith.constant 0 : i32
    %c0_i32_0 = arith.constant 0 : i32
    return %c0_i32, %arg1 : i32, i32
  }
  func.func @transform_4(%arg0: i32, %arg1: i32) -> (i32, i32) {
    %c0_i32 = arith.constant 0 : i32
    %c0_i32_0 = arith.constant 0 : i32
    return %c0_i32, %arg1 : i32, i32
  }
  func.func @transform_5(%arg0: i32, %arg1: i32) -> (i32, i32) {
    %c0_i32 = arith.constant 0 : i32
    return %arg0, %arg1 : i32, i32
  }
}

</mosaic_0001>

<bundles_post_ra>
// kernel: tpu_custom_call.1
= control target key start
LH: loop header
LB: loop body
LE: loop exit
PB: predicated region body
PF: predicated region fallthrough
CT: control target
= control target key end

     0   :  { %10 = vsyncpa [#allocation3], 0  ;;  %s877_s0 = inlined_call_operand.hbm [shape: f32[32,128], index: 0, kind: input, shape index: {}]   ;;  %s878_s1 = inlined_call_operand.hbm [shape: f32[32,128], index: 1, kind: input, shape index: {}]   ;;  %s879_s2 = inlined_call_operand.vmem [shape: f32[1,128], index: 2, kind: input, shape index: {}]   ;;  %s880_s3 = inlined_call_operand.vmem [shape: f32[1,128], index: 3, kind: input, shape index: {}]   ;;  %s881_s4 = inlined_call_operand.vmem [shape: f32[1,128], index: 4, kind: input, shape index: {}]   ;;  %s882_s5 = inlined_call_operand.hbm [shape: f32[8,128], index: 5, kind: output, shape index: {}]  }
   0x1   :  { %11 = vsyncpa [#allocation6], 0 }
   0x2   :  { %12 = vsyncpa [#allocation4], 0  ;;  %s17_s20 = sshll.u32 %s877_s0, 4  ;;  %s569_s21 = smov [#allocation2]   ;;  %s18_s20 = int_to_ptr.hbm [resolvable:$true] %s17_s20 }
   0x3   :  { %s19_s22 = sshll.u32 %s569_s21, 4  ;;  %s30_s25 = sshll.u32 %s878_s1, 4  ;;  %s20_s22 = int_to_ptr.vmem [resolvable:$true] %s19_s22  ;;  %s31_s25 = int_to_ptr.hbm [resolvable:$true] %s30_s25 }
   0x4   :  { %s570_s26 = smov 128   ;;  %s571_s27 = smov 8  }
   0x5   :  { %25 = dma.hbm_to_vmem [thread:$0]  %s18_s20, 512, %s20_s22, [#allocation3], %s570_s26, %s570_s26, %s571_s27  }
   0x6   :  { %s572_s28 = smov [#allocation5]  }
   0x7   :  { %s32_s29 = sshll.u32 %s572_s28, 4  ;;  %s33_s29 = int_to_ptr.vmem [resolvable:$true] %s32_s29 }
   0x8   :  { %38 = dma.hbm_to_vmem [thread:$0]  %s31_s25, 512, %s33_s29, [#allocation6], %s570_s26, %s570_s26, %s571_s27  }
   0x9   :  { %563 = dma.done.wait [#allocation3], 512  }
   0xa   :  { %564 = vsyncadd [#allocation3], 4294966784 }
   0xb   :  { %565 = dma.done.wait [#allocation6], 512  }
   0xc   :  { %566 = vsyncadd [#allocation6], 4294966784  ;;  %v56_v0 = vld [vmem:[#allocation2] sm:$0xff]  ;;  %v57_v1 = vld [vmem:[#allocation2 + $0x8] sm:$0xff]  ;;  %s384_s10 = sshll.u32 %s882_s5, 4  ;;  %s385_s10 = int_to_ptr.hbm [resolvable:$true] %s384_s10 }
   0xd   :  { %v58_v2 = vld [vmem:[#allocation2 + $0x10] sm:$0xff]  ;;  %v59_v3 = vld [vmem:[#allocation2 + $0x18] sm:$0xff]  ;;  %v610_v4 = vld [vmem:[#allocation5] sm:$0xff]  ;;  %v94_v5 = vadd.f32 1e-08, %v56_v0 }
   0xe   :  { %v612_v6 = vld [vmem:[#allocation5 + $0x8] sm:$0xff]  ;;  %v614_v7 = vld [vmem:[#allocation5 + $0x10] sm:$0xff]  ;;  %v619_v8 = vld [vmem:[%s879_s2] ss:$0 sm:$0xff]  ;;  %v95_v9 = vadd.f32 1e-08, %v57_v1 }
   0xf   :  { %v96_v10 = vadd.f32 1e-08, %v58_v2  ;;  %v97_v11 = vadd.f32 1e-08, %v59_v3  ;;  %411 = vlog2.f32 %v94_v5  ;;  %v621_v12 = vld [vmem:[#allocation5 + $0x18] sm:$0xff]  ;;  %v67_v13 = vadd.f32 %v619_v8, %v56_v0 }
  0x10   :  { %v68_v14 = vadd.f32 %v619_v8, %v57_v1  ;;  %v69_v15 = vadd.f32 %v619_v8, %v58_v2  ;;  %v70_v16 = vadd.f32 %v619_v8, %v59_v3  ;;  %413 = vlog2.f32 %v95_v9  ;;  %v659_v45 = vld [vmem:[%s880_s3] ss:$0 sm:$0xff] }
  0x11   :  { %v118_v17 = vadd.f32 %v619_v8, %v610_v4  ;;  %v119_v18 = vadd.f32 %v619_v8, %v612_v6  ;;  %v120_v19 = vadd.f32 %v619_v8, %v614_v7  ;;  %v71_v20 = vadd.f32 1e-08, %v67_v13 }
  0x12   :  { %v72_v21 = vadd.f32 1e-08, %v68_v14  ;;  %v73_v22 = vadd.f32 1e-08, %v69_v15  ;;  %415 = vlog2.f32 %v96_v10  ;;  %v74_v23 = vadd.f32 1e-08, %v70_v16 }
  0x13   :  { %417 = vlog2.f32 %v97_v11  ;;  %v121_v24 = vadd.f32 %v619_v8, %v621_v12  ;;  %v635_v25 = vadd.f32 6.0, %v118_v17  ;;  %v637_v27 = vadd.f32 6.0, %v119_v18 }
  0x14   :  { %419 = vlog2.f32 %v71_v20  ;;  %v190_v28 = vadd.f32 5.0, %v118_v17  ;;  %v191_v29 = vadd.f32 5.0, %v119_v18  ;;  %v639_v30 = vadd.f32 6.0, %v120_v19 }
  0x15   :  { %v412_v26 = vpop.eup %411  ;;  %421 = vlog2.f32 %v72_v21  ;;  %v641_v32 = vadd.f32 6.0, %v121_v24  ;;  %v192_v34 = vadd.f32 5.0, %v120_v19  ;;  %v193_v35 = vadd.f32 5.0, %v121_v24 }
  0x16   :  { %423 = vlog2.f32 %v73_v22  ;;  %v414_v31 = vpop.eup %413  ;;  %v645_v37 = vmul.f32 %v190_v28, %v118_v17  ;;  %v647_v38 = vmul.f32 %v191_v29, %v119_v18  ;;  %v395_v46 = vadd.f32 -0.5, %v635_v25 }
  0x17   :  { %425 = vlog2.f32 %v74_v23  ;;  %v652_v42 = vmul.f32 %v192_v34, %v120_v19  ;;  %v654_v43 = vmul.f32 %v193_v35, %v121_v24  ;;  %v99_v51 = vmul.f32 0.6931472, %v412_v26 }
  0x18   :  { %v416_v33 = vpop.eup %415  ;;  %427 = vrcp.f32 %v635_v25  ;;  %v198_v47 = vadd.f32 4.0, %v645_v37  ;;  %v199_v48 = vadd.f32 4.0, %v647_v38  ;;  %v396_v52 = vadd.f32 -0.5, %v637_v27 }
  0x19   :  { %v418_v36 = vpop.eup %417  ;;  %429 = vrcp.f32 %v637_v27  ;;  %v673_v55 = vmul.f32 0.6931472, %v414_v31  ;;  %v397_v56 = vadd.f32 -0.5, %v639_v30  ;;  %v677_v57 = vadd.f32 -0.5, %v641_v32 }
  0x1a   :  { %v420_v39 = vpop.eup %419  ;;  %431 = vrcp.f32 %v639_v30  ;;  %v681_v59 = vmul.f32 0.6931472, %v416_v33  ;;  %v683_v60 = vmul.f32 0.6931472, %v418_v36  ;;  %v200_v61 = vadd.f32 4.0, %v652_v42 }
  0x1b   :  { %v422_v40 = vpop.eup %421  ;;  %433 = vrcp.f32 %v641_v32  ;;  %v76_v50 = vmul.f32 0.6931472, %v420_v39  ;;  %v201_v62 = vadd.f32 4.0, %v654_v43  ;;  %v202_v2 = vmul.f32 %v198_v47, %v645_v37 }
  0x1c   :  { %v424_v41 = vpop.eup %423  ;;  %435 = vlog2.f32 %v635_v25  ;;  %v671_v54 = vmul.f32 0.6931472, %v422_v40  ;;  %v203_v3 = vmul.f32 %v199_v48, %v647_v38 }
  0x1d   :  { %v426_v44 = vpop.eup %425  ;;  %437 = vlog2.f32 %v637_v27  ;;  %v689_v0 = vmul.f32 0.6931472, %v424_v41  ;;  %v86_v10 = vsub.f32 %v659_v45, %v76_v50  ;;  %v106_v11 = vsub.f32 %v99_v51, %v76_v50 }
  0x1e   :  { %v665_v49 = vpop.eup %427  ;;  %439 = vlog2.f32 %v639_v30  ;;  %v695_v9 = vmul.f32 0.6931472, %v426_v44  ;;  %v87_v15 = vsub.f32 %v659_v45, %v671_v54  ;;  %v107_v20 = vsub.f32 %v673_v55, %v671_v54 }
  0x1f   :  { %v669_v53 = vpop.eup %429  ;;  %v130_v1 = vmul.f32 %v665_v49, %v665_v49  ;;  %441 = vlog2.f32 %v641_v32  ;;  %v88_v29 = vsub.f32 %v659_v45, %v689_v0  ;;  %v712_v31 = vmul.f32 %v619_v8, %v86_v10 }
  0x20   :  { %v679_v58 = vpop.eup %431  ;;  %v131_v13 = vmul.f32 %v669_v53, %v669_v53  ;;  %v108_v41 = vsub.f32 %v681_v59, %v689_v0  ;;  %v717_v44 = vmul.f32 %v106_v11, %v610_v4  ;;  %v89_v50 = vsub.f32 %v659_v45, %v695_v9 }
  0x21   :  { %v687_v63 = vpop.eup %433  ;;  %v132_v16 = vmul.f32 %v679_v58, %v679_v58  ;;  %v134_v18 = vmul.f32 -0.0005952381, %v130_v1  ;;  %443 = vlog2.f32 %v202_v2  ;;  %v109_v2 = vsub.f32 %v683_v60, %v695_v9 }
  0x22   :  { %v436_v5 = vpop.eup %435  ;;  %v133_v17 = vmul.f32 %v687_v63, %v687_v63  ;;  %v135_v21 = vmul.f32 -0.0005952381, %v131_v13  ;;  %445 = vlog2.f32 %v203_v3  ;;  %v738_v3 = vmul.f32 %v619_v8, %v88_v29 }
  0x23   :  { %v438_v14 = vpop.eup %437  ;;  %v167_v22 = vmul.f32 0.6931472, %v436_v5  ;;  %v136_v24 = vmul.f32 -0.0005952381, %v132_v16  ;;  %v138_v28 = vadd.f32 0.0007936508, %v134_v18  ;;  %v722_v5 = vmul.f32 %v619_v8, %v87_v15 }
  0x24   :  { %v440_v19 = vpop.eup %439  ;;  %v169_v23 = vmul.f32 0.6931472, %v438_v14  ;;  %v137_v26 = vmul.f32 -0.0005952381, %v133_v17  ;;  %v139_v33 = vadd.f32 0.0007936508, %v135_v21 }
  0x25   :  { %v171_v34 = vmul.f32 0.6931472, %v440_v19  ;;  %v140_v35 = vadd.f32 0.0007936508, %v136_v24  ;;  %v142_v39 = vmul.f32 %v138_v28, %v130_v1  ;;  %v174_v40 = vmul.f32 %v395_v46, %v167_v22  ;;  %v442_v18 = vpop.eup %441 }
  0x26   :  { %v141_v36 = vadd.f32 0.0007936508, %v137_v26  ;;  %v143_v47 = vmul.f32 %v139_v33, %v131_v13  ;;  %v175_v48 = vmul.f32 %v396_v52, %v169_v23  ;;  %v204_v46 = vmul.f32 %v200_v61, %v652_v42 }
  0x27   :  { %v144_v51 = vmul.f32 %v140_v35, %v132_v16  ;;  %v146_v55 = vadd.f32 -0.0027777778, %v142_v39  ;;  %v176_v14 = vmul.f32 %v397_v56, %v171_v34  ;;  %v178_v19 = vsub.f32 %v174_v40, %v635_v25 }
  0x28   :  { %v145_v54 = vmul.f32 %v141_v36, %v133_v17  ;;  %v147_v10 = vadd.f32 -0.0027777778, %v143_v47  ;;  %v173_v21 = vmul.f32 0.6931472, %v442_v18  ;;  %v179_v22 = vsub.f32 %v175_v48, %v637_v27 }
  0x29   :  { %v148_v59 = vadd.f32 -0.0027777778, %v144_v51  ;;  %v150_v11 = vmul.f32 %v146_v55, %v130_v1  ;;  %v205_v23 = vmul.f32 %v201_v62, %v654_v43  ;;  %v180_v61 = vsub.f32 %v176_v14, %v639_v30 }
  0x2a   :  { %v149_v0 = vadd.f32 -0.0027777778, %v145_v54  ;;  %v151_v52 = vmul.f32 %v147_v10, %v131_v13  ;;  %v177_v56 = vmul.f32 %v677_v57, %v173_v21  ;;  %v182_v1 = vadd.f32 0.9189385, %v178_v19 }
  0x2b   :  { %v152_v24 = vmul.f32 %v148_v59, %v132_v16  ;;  %v154_v15 = vadd.f32 0.083333336, %v150_v11  ;;  %447 = vlog2.f32 %v204_v46  ;;  %v218_v25 = vadd.f32 6.0, %v645_v37 }
  0x2c   :  { %v153_v26 = vmul.f32 %v149_v0, %v133_v17  ;;  %v155_v28 = vadd.f32 0.083333336, %v151_v52  ;;  %449 = vlog2.f32 %v205_v23  ;;  %v219_v62 = vadd.f32 6.0, %v647_v38 }
  0x2d   :  { %v156_v33 = vadd.f32 0.083333336, %v152_v24  ;;  %v158_v27 = vmul.f32 %v665_v49, %v154_v15  ;;  %v181_v57 = vsub.f32 %v177_v56, %v641_v32  ;;  %v183_v30 = vadd.f32 0.9189385, %v179_v22  ;;  %v444_v49 = vpop.eup %443 }
  0x2e   :  { %v157_v13 = vadd.f32 0.083333336, %v153_v26  ;;  %v159_v16 = vmul.f32 %v669_v53, %v155_v28  ;;  %v111_v17 = vmul.f32 %v107_v20, %v612_v6  ;;  %v184_v37 = vadd.f32 0.9189385, %v180_v61  ;;  %v446_v53 = vpop.eup %445 }
  0x2f   :  { %v220_v34 = vadd.f32 6.0, %v652_v42  ;;  %v160_v35 = vmul.f32 %v679_v58, %v156_v33  ;;  %v221_v38 = vadd.f32 6.0, %v654_v43  ;;  %451 = vlog2.f32 %v218_v25 }
  0x30   :  { %v245_v60 = vadd.f32 1.0, %v610_v4  ;;  %v746_v32 = vmul.f32 %v108_v41, %v614_v7  ;;  %v161_v29 = vmul.f32 %v687_v63, %v157_v13  ;;  %v186_v36 = vadd.f32 %v182_v1, %v158_v27 }
  0x31   :  { %453 = vlog2.f32 %v219_v62  ;;  %v448_v20 = vpop.eup %447  ;;  %v185_v39 = vadd.f32 0.9189385, %v181_v57  ;;  %v749_v40 = vadd.f32 %v183_v30, %v159_v16  ;;  %v246_v42 = vadd.f32 1.0, %v612_v6 }
  0x32   :  { %v753_v58 = vadd.f32 1.0, %v614_v7  ;;  %v450_v43 = vpop.eup %449  ;;  %v207_v47 = vmul.f32 0.6931472, %v444_v49  ;;  %455 = vlog2.f32 %v220_v34  ;;  %v756_v4 = vadd.f32 1.0, %v621_v12 }
  0x33   :  { %v758_v41 = vadd.f32 6.0, %v245_v60  ;;  %v760_v63 = vadd.f32 %v184_v37, %v160_v35  ;;  %457 = vlog2.f32 %v221_v38  ;;  %v762_v48 = vadd.f32 6.0, %v246_v42 }
  0x34   :  { %v765_v51 = vadd.f32 6.0, %v753_v58  ;;  %v209_v6 = vmul.f32 0.6931472, %v446_v53  ;;  %v767_v54 = vmul.f32 0.6931472, %v448_v20  ;;  %v770_v7 = vadd.f32 6.0, %v756_v4 }
  0x35   :  { %459 = vrcp.f32 %v758_v41  ;;  %v452_v55 = vpop.eup %451  ;;  %v775_v10 = vadd.f32 %v717_v44, %v712_v31  ;;  %v777_v14 = vadd.f32 %v185_v39, %v161_v29  ;;  %v779_v46 = vmul.f32 0.6931472, %v450_v43 }
  0x36   :  { %461 = vrcp.f32 %v762_v48  ;;  %v786_v59 = vmul.f32 %v619_v8, %v89_v50  ;;  %v317_v0 = vadd.f32 5.0, %v245_v60  ;;  %v318_v11 = vadd.f32 5.0, %v246_v42 }
  0x37   :  { %v454_v18 = vpop.eup %453  ;;  %463 = vrcp.f32 %v765_v51  ;;  %v790_v31 = vmul.f32 %v109_v2, %v621_v12  ;;  %v793_v44 = vadd.f32 %v111_v17, %v722_v5  ;;  %v214_v19 = vsub.f32 %v186_v36, %v207_v47 }
  0x38   :  { %465 = vrcp.f32 %v770_v7  ;;  %v456_v52 = vpop.eup %455  ;;  %v215_v21 = vsub.f32 %v749_v40, %v209_v6  ;;  %v216_v8 = vsub.f32 %v760_v63, %v767_v54  ;;  %v223_v45 = vmul.f32 0.6931472, %v452_v55 }
  0x39   :  { %467 = vlog2.f32 %v758_v41  ;;  %v458_v9 = vpop.eup %457  ;;  %v225_v50 = vmul.f32 0.6931472, %v454_v18  ;;  %v399_v5 = vadd.f32 -0.5, %v758_v41  ;;  %v400_v23 = vadd.f32 -0.5, %v762_v48 }
  0x3a   :  { %469 = vlog2.f32 %v762_v48  ;;  %v808_v24 = vmul.f32 %v317_v0, %v245_v60  ;;  %v810_v26 = vmul.f32 %v318_v11, %v246_v42  ;;  %v814_v28 = vmul.f32 0.6931472, %v456_v52 }
  0x3b   :  { %v804_v22 = vpop.eup %459  ;;  %471 = vlog2.f32 %v765_v51  ;;  %v401_v61 = vadd.f32 -0.5, %v765_v51  ;;  %v822_v1 = vsub.f32 %v214_v19, %v223_v45  ;;  %v402_v13 = vadd.f32 -0.5, %v770_v7 }
  0x3c   :  { %v812_v15 = vpop.eup %461  ;;  %v257_v56 = vmul.f32 %v804_v22, %v804_v22  ;;  %473 = vlog2.f32 %v770_v7  ;;  %v319_v27 = vadd.f32 5.0, %v753_v58  ;;  %v830_v2 = vmul.f32 0.6931472, %v458_v9 }
  0x3d   :  { %v820_v33 = vpop.eup %463  ;;  %v258_v25 = vmul.f32 %v812_v15, %v812_v15  ;;  %v320_v30 = vadd.f32 5.0, %v756_v4  ;;  %v325_v49 = vadd.f32 4.0, %v808_v24  ;;  %v326_v35 = vadd.f32 4.0, %v810_v26 }
  0x3e   :  { %v828_v62 = vpop.eup %465  ;;  %v259_v16 = vmul.f32 %v820_v33, %v820_v33  ;;  %v261_v57 = vmul.f32 -0.0005952381, %v257_v56  ;;  %v839_v60 = vsub.f32 %v215_v21, %v225_v50  ;;  %v323_v43 = vmul.f32 %v319_v27, %v753_v58 }
  0x3f   :  { %v468_v17 = vpop.eup %467  ;;  %v260_v37 = vmul.f32 %v828_v62, %v828_v62  ;;  %v262_v34 = vmul.f32 -0.0005952381, %v258_v25 }
  0x40   :  { %v470_v38 = vpop.eup %469  ;;  %v263_v53 = vmul.f32 -0.0005952381, %v259_v16  ;;  %v265_v29 = vadd.f32 0.0007936508, %v261_v57  ;;  %v294_v36 = vmul.f32 0.6931472, %v468_v17  ;;  %v324_v57 = vmul.f32 %v320_v30, %v756_v4 }
  0x41   :  { %v472_v20 = vpop.eup %471  ;;  %v264_v39 = vmul.f32 -0.0005952381, %v260_v37  ;;  %v266_v40 = vadd.f32 0.0007936508, %v262_v34  ;;  %v296_v42 = vmul.f32 0.6931472, %v470_v38 }
  0x42   :  { %v474_v47 = vpop.eup %473  ;;  %v267_v6 = vadd.f32 0.0007936508, %v263_v53  ;;  %v269_v55 = vmul.f32 %v265_v29, %v257_v56  ;;  %v298_v18 = vmul.f32 0.6931472, %v472_v20  ;;  %v301_v0 = vmul.f32 %v399_v5, %v294_v36 }
  0x43   :  { %v268_v11 = vadd.f32 0.0007936508, %v264_v39  ;;  %v270_v19 = vmul.f32 %v266_v40, %v258_v25  ;;  %v300_v52 = vmul.f32 0.6931472, %v474_v47  ;;  %v302_v45 = vmul.f32 %v400_v23, %v296_v42 }
  0x44   :  { %v271_v21 = vmul.f32 %v267_v6, %v259_v16  ;;  %v273_v9 = vadd.f32 -0.0027777778, %v269_v55  ;;  %v303_v50 = vmul.f32 %v401_v61, %v298_v18  ;;  %v305_v34 = vsub.f32 %v301_v0, %v758_v41 }
  0x45   :  { %v272_v17 = vmul.f32 %v268_v11, %v260_v37  ;;  %v274_v12 = vadd.f32 -0.0027777778, %v270_v19  ;;  %v327_v38 = vadd.f32 4.0, %v323_v43  ;;  %v304_v53 = vmul.f32 %v402_v13, %v300_v52 }
  0x46   :  { %v275_v58 = vadd.f32 -0.0027777778, %v271_v21  ;;  %v277_v27 = vmul.f32 %v273_v9, %v257_v56  ;;  %v329_v29 = vmul.f32 %v325_v49, %v808_v24  ;;  %v306_v20 = vsub.f32 %v302_v45, %v762_v48 }
  0x47   :  { %v276_v5 = vadd.f32 -0.0027777778, %v272_v17  ;;  %v278_v36 = vmul.f32 %v274_v12, %v258_v25  ;;  %v330_v23 = vmul.f32 %v326_v35, %v810_v26  ;;  %v307_v4 = vsub.f32 %v303_v50, %v765_v51 }
  0x48   :  { %v279_v39 = vmul.f32 %v275_v58, %v259_v16  ;;  %v281_v61 = vadd.f32 0.083333336, %v277_v27  ;;  %v328_v30 = vadd.f32 4.0, %v324_v57  ;;  %v309_v41 = vadd.f32 0.9189385, %v305_v34 }
  0x49   :  { %v280_v40 = vmul.f32 %v276_v5, %v260_v37  ;;  %v282_v42 = vadd.f32 0.083333336, %v278_v36  ;;  %v331_v47 = vmul.f32 %v327_v38, %v323_v43  ;;  %v308_v56 = vsub.f32 %v304_v53, %v770_v7 }
  0x4a   :  { %v283_v6 = vadd.f32 0.083333336, %v279_v39  ;;  %v332_v13 = vmul.f32 %v328_v30, %v324_v57  ;;  %475 = vlog2.f32 %v329_v29  ;;  %v285_v12 = vmul.f32 %v804_v22, %v281_v61 }
  0x4b   :  { %v284_v49 = vadd.f32 0.083333336, %v280_v40  ;;  %477 = vlog2.f32 %v330_v23  ;;  %v345_v48 = vadd.f32 6.0, %v808_v24  ;;  %v286_v25 = vmul.f32 %v812_v15, %v282_v42 }
  0x4c   :  { %v310_v16 = vadd.f32 0.9189385, %v306_v20  ;;  %479 = vlog2.f32 %v331_v47  ;;  %v346_v51 = vadd.f32 6.0, %v810_v26  ;;  %v287_v37 = vmul.f32 %v820_v33, %v283_v6 }
  0x4d   :  { %v311_v35 = vadd.f32 0.9189385, %v307_v4  ;;  %481 = vlog2.f32 %v332_v13  ;;  %v347_v55 = vadd.f32 6.0, %v323_v43  ;;  %v288_v7 = vmul.f32 %v828_v62, %v284_v49 }
  0x4e   :  { %v312_v18 = vadd.f32 0.9189385, %v308_v56  ;;  %v348_v0 = vadd.f32 6.0, %v324_v57  ;;  %483 = vlog2.f32 %v345_v48  ;;  %v116_v22 = vadd.f32 %v746_v32, %v738_v3  ;;  %v410_v32 = vld [vmem:[%s881_s4] ss:$0 sm:$0xff]  ;;  %s573_s4 = smov [#allocation7]  }
  0x4f   :  { %v232_v24 = vsub.f32 %v216_v8, %v814_v28  ;;  %v313_v15 = vadd.f32 %v309_v41, %v285_v12  ;;  %485 = vlog2.f32 %v346_v51  ;;  %v117_v33 = vadd.f32 %v790_v31, %v786_v59  ;;  %s382_s7 = sshll.u32 %s573_s4, 4  ;;  %s383_s7 = int_to_ptr.vmem [resolvable:$true] %s382_s7 }
  0x50   :  { %v476_v26 = vpop.eup %475  ;;  %v883_v62 = vsub.f32 %v777_v14, %v779_v46  ;;  %v314_v11 = vadd.f32 %v310_v16, %v286_v25  ;;  %487 = vlog2.f32 %v347_v55  ;;  %v234_v3 = vadd.f32 %v822_v1, %v775_v10 }
  0x51   :  { %v478_v19 = vpop.eup %477  ;;  %v315_v63 = vadd.f32 %v311_v35, %v287_v37  ;;  %v334_v54 = vmul.f32 0.6931472, %v476_v26  ;;  %489 = vlog2.f32 %v348_v0  ;;  %v235_v59 = vadd.f32 %v839_v60, %v793_v44 }
  0x52   :  { %v233_v43 = vsub.f32 %v883_v62, %v830_v2  ;;  %v480_v8 = vpop.eup %479  ;;  %v316_v31 = vadd.f32 %v312_v18, %v288_v7  ;;  %v336_v14 = vmul.f32 0.6931472, %v478_v19  ;;  %v236_v28 = vadd.f32 %v232_v24, %v116_v22 }
  0x53   :  { %v482_v46 = vpop.eup %481  ;;  %v338_v2 = vmul.f32 0.6931472, %v480_v8  ;;  %v341_v52 = vsub.f32 %v313_v15, %v334_v54  ;;  %v241_v50 = vsub.f32 %v234_v3, %v410_v32  ;;  %v242_v38 = vsub.f32 %v235_v59, %v410_v32 }
  0x54   :  { %v484_v45 = vpop.eup %483  ;;  %v237_v21 = vadd.f32 %v233_v43, %v117_v33  ;;  %v340_v10 = vmul.f32 0.6931472, %v482_v46  ;;  %v342_v1 = vsub.f32 %v314_v11, %v336_v14  ;;  %v243_v44 = vsub.f32 %v236_v28, %v410_v32 }
  0x55   :  { %v486_v9 = vpop.eup %485  ;;  %v343_v57 = vsub.f32 %v315_v63, %v338_v2  ;;  %v350_v17 = vmul.f32 0.6931472, %v484_v45 }
  0x56   :  { %v488_v34 = vpop.eup %487  ;;  %v344_v58 = vsub.f32 %v316_v31, %v340_v10  ;;  %v352_v27 = vmul.f32 0.6931472, %v486_v9  ;;  %v244_v5 = vsub.f32 %v237_v21, %v410_v32 }
  0x57   :  { %v490_v53 = vpop.eup %489  ;;  %v354_v60 = vmul.f32 0.6931472, %v488_v34  ;;  %v357_v29 = vsub.f32 %v341_v52, %v350_v17 }
  0x58   :  { %v356_v36 = vmul.f32 0.6931472, %v490_v53  ;;  %v358_v20 = vsub.f32 %v342_v1, %v352_v27 }
  0x59   :  { %v359_v23 = vsub.f32 %v343_v57, %v354_v60  ;;  %v361_v39 = vsub.f32 %v241_v50, %v357_v29 }
  0x5a   :  { %v360_v61 = vsub.f32 %v344_v58, %v356_v36  ;;  %v362_v4 = vsub.f32 %v242_v38, %v358_v20 }
  0x5b   :  { %v363_v30 = vsub.f32 %v243_v44, %v359_v23  ;;  %vm365_vm0 = vcmp.ne.f32.partialorder %v361_v39, %v361_v39 }
  0x5c   :  { %v364_v40 = vsub.f32 %v244_v5, %v360_v61  ;;  %vm366_vm1 = vcmp.ne.f32.partialorder %v362_v4, %v362_v4  ;;  %v369_v42 = vsel %vm365_vm0, inf, %v361_v39 }
  0x5d   :  { %vm367_vm2 = vcmp.ne.f32.partialorder %v363_v30, %v363_v30  ;;  %v370_v41 = vsel %vm366_vm1, inf, %v362_v4 }
  0x5e   :  { %vm368_vm3 = vcmp.ne.f32.partialorder %v364_v40, %v364_v40  ;;  %v371_v47 = vsel %vm367_vm2, inf, %v363_v30  ;;  %v373_v6 = vadd.f32 %v370_v41, %v369_v42 }
  0x5f   :  { %v372_v56 = vsel %vm368_vm3, inf, %v364_v40 }
  0x60   :  { %v374_v13 = vadd.f32 %v373_v6, %v371_v47 }
  0x62   :  { %v375_v49 = vadd.f32 %v374_v13, %v372_v56 }
  0x64   :  { %376 = vst [vmem:[#allocation7] sm:$0xff] %v375_v49 }
  0x65   :  { %387 = dma.vmem_to_hbm [thread:$0]  %s383_s7, 128, %s385_s10, [#allocation4]  }
  0x66   :  { %567 = dma.done.wait [#allocation4], 128  }
  0x67   :  { %568 = vsyncadd [#allocation4], 4294967168 }
  0x68   :  { %392 = vsyncpa [#allocation3], 1 }
  0x69   :  { %393 = vsyncpa [#allocation6], 1 }
  0x6a   :  { %394 = vsyncpa [#allocation4], 1 }

</bundles_post_ra>
